<compile_context>
chip_gen: v5e
topology: v5e:2x2
jax: 0.10.0
libtpu: 0.0.40
codegen_flags: <defaults>
</compile_context>

<pallas_src>
import functools
import math

import jax
import jax.numpy as jnp
from jax.experimental import pallas as pl
from jax.experimental.pallas import tpu as pltpu


def _round_up(a, b):
    return (a + b - 1) // b * b


def _cdiv(a, b):
    return (a + b - 1) // b


# ----------------------------------------------------------------------------
# Kernel 1: fuse w = mu + sigma*eps once per forward call (f32 math, one cast).
# ----------------------------------------------------------------------------
def fuse_weights_kernel(w1_ref, w2_ref, w3_ref, fw1_ref, fw2_ref, fw3_ref):
    fw1_ref[...] = (w1_ref[0] + w1_ref[1] * w1_ref[2]).astype(fw1_ref.dtype)
    fw2_ref[...] = (w2_ref[0] + w2_ref[1] * w2_ref[2]).astype(fw2_ref.dtype)
    fw3_ref[...] = (w3_ref[0] + w3_ref[1] * w3_ref[2]).astype(fw3_ref.dtype)


def _fuse_noisy_weights(packed, matmul_dtype):
    w1, w2, w3 = packed["w1"], packed["w2"], packed["w3"]
    return pl.pallas_call(
        fuse_weights_kernel,
        out_shape=(
            jax.ShapeDtypeStruct(w1.shape[1:], matmul_dtype),
            jax.ShapeDtypeStruct(w2.shape[1:], matmul_dtype),
            jax.ShapeDtypeStruct(w3.shape[1:], matmul_dtype),
        ),
    )(w1, w2, w3)


# ----------------------------------------------------------------------------
# Kernel 2: one batch tile of the full Noise_DQN forward (training mode).
# ----------------------------------------------------------------------------
def noisy_dqn_kernel(x_ref, w1_ref, w2_ref, w3_ref, b_ref, o_ref, *,
                     out_dim, matmul_dtype):
    h_p = w1_ref.shape[-1]      # padded hidden width (multiple of 128)
    out_p = w3_ref.shape[-1]    # padded output width (multiple of 128)

    x = x_ref[...].astype(matmul_dtype)                        # (bt, in)

    # Fused noisy biases: tiny f32 VPU work, hidden under the matmuls.
    b = b_ref[...]                                             # (3, 3, bp) f32
    b1 = b[0, 0:1, :h_p] + b[0, 1:2, :h_p] * b[0, 2:3, :h_p]
    b2 = b[1, 0:1, :h_p] + b[1, 1:2, :h_p] * b[1, 2:3, :h_p]
    b3 = b[2, 0:1, :out_p] + b[2, 1:2, :out_p] * b[2, 2:3, :out_p]

    # fc1 -> ReLU -> fc2 -> ReLU -> fc3 (weights are pre-fused, (in, out)).
    h = jnp.dot(x, w1_ref[...], preferred_element_type=jnp.float32) + b1
    h = jnp.maximum(h, 0.0).astype(matmul_dtype)
    h = jnp.dot(h, w2_ref[...], preferred_element_type=jnp.float32) + b2
    h = jnp.maximum(h, 0.0).astype(matmul_dtype)
    out = jnp.dot(h, w3_ref[...], preferred_element_type=jnp.float32) + b3

    # Store only the real output columns (narrow masked store; 32x less HBM
    # traffic than the 128-wide padded store + wrapper slice).
    o_ref[...] = out[:, :out_dim].astype(o_ref.dtype)


# ----------------------------------------------------------------------------
# One-time parameter packing (do NOT call per forward).  Always f32.
# ----------------------------------------------------------------------------
def pack_noise_dqn_params(params, *, lane=128):
    """Packs the 18 NoisyLinear tensors into 4 slabs.

    Weights are transposed to (in, out) and stacked as [mu, sigma, eps]; the
    hidden / output dims are zero-padded to multiples of `lane` (padding mu,
    sigma AND eps with zeros keeps the fused weight exactly zero there)."""
    def pad_to(a, shape):
        return jnp.pad(a, [(0, t - s) for s, t in zip(a.shape, shape)])

    in_dim = params["fc1"]["w_mu"].shape[1]
    hid = params["fc1"]["w_mu"].shape[0]
    out_dim = params["fc3"]["w_mu"].shape[0]
    h_p = _round_up(hid, lane)
    out_p = _round_up(out_dim, lane)
    bp = max(h_p, out_p)

    def w_slab(p, in_p, o_p):
        mats = [p["w_mu"].T, p["w_sigma"].T, p["w_eps"].T]          # (in, out)
        mats = [pad_to(m.astype(jnp.float32), (in_p, o_p)) for m in mats]
        return jnp.stack(mats)                                      # (3, in_p, o_p)

    def b_rows(p, o_p):
        vecs = [p["b_mu"], p["b_sigma"], p["b_eps"]]
        vecs = [pad_to(v.astype(jnp.float32), (o_p,)) for v in vecs]
        return jnp.stack(vecs)                                      # (3, o_p)

    bias = jnp.stack([
        pad_to(b_rows(params["fc1"], h_p), (3, bp)),
        pad_to(b_rows(params["fc2"], h_p), (3, bp)),
        pad_to(b_rows(params["fc3"], out_p), (3, bp)),
    ])                                                              # (3, 3, bp)

    return {
        "w1": w_slab(params["fc1"], in_dim, h_p),
        "w2": w_slab(params["fc2"], h_p, h_p),
        "w3": w_slab(params["fc3"], h_p, out_p),
        "b": bias,
    }


# ----------------------------------------------------------------------------
# Batch tiling: big tiles (amortize per-step overhead), >=2 tiles for large
# batches so the "parallel" axis can use both v7x TensorCores, minimal padding.
# ----------------------------------------------------------------------------
def _choose_batch_tile(batch, *, max_tile=1024, min_split=256):
    batch8 = _round_up(batch, 8)
    if batch8 <= min_split:
        return batch8, batch8                    # single tile
    n_tiles = max(2, _cdiv(batch8, max_tile))
    bt = _round_up(_cdiv(batch8, n_tiles), 8)
    return bt, _round_up(batch8, bt)


# ----------------------------------------------------------------------------
# Forward wrapper.
# ----------------------------------------------------------------------------
def noise_dqn_forward(x, packed, *, output_dim, matmul_dtype=jnp.float32):
    batch, input_dim = x.shape
    h_p = packed["w1"].shape[-1]
    out_p = packed["w3"].shape[-1]
    bp = packed["b"].shape[-1]

    # 1) Fuse mu + sigma*eps once per forward (not once per batch tile).
    fw1, fw2, fw3 = _fuse_noisy_weights(packed, matmul_dtype)

    # 2) Batch tiling.
    bt, batch_p = _choose_batch_tile(batch)
    if batch_p != batch:
        x = jnp.pad(x, ((0, batch_p - batch), (0, 0)))
    grid = (batch_p // bt,)

    # 3) Explicit VMEM budget (safe on v7x 64 MiB / v5e 16 MiB-default scoped).
    mm_bytes = jnp.dtype(matmul_dtype).itemsize
    weight_bytes = (input_dim * h_p + h_p * h_p + h_p * out_p) * mm_bytes
    stream_bytes = 2 * bt * (input_dim * x.dtype.itemsize + output_dim * 4)
    budget = 2 * weight_bytes + 2 * 9 * bp * 4 + stream_bytes + (8 << 20)
    vmem_limit = int(min(max(budget, 32 << 20), 64 << 20))

    kernel = functools.partial(
        noisy_dqn_kernel, out_dim=output_dim, matmul_dtype=matmul_dtype)

    out = pl.pallas_call(
        kernel,
        out_shape=jax.ShapeDtypeStruct((batch_p, output_dim), jnp.float32),
        grid=grid,
        in_specs=[
            pl.BlockSpec((bt, input_dim), lambda i: (i, 0)),      # x: batch-tiled
            pl.BlockSpec(fw1.shape, lambda i: (0, 0)),            # weights: VMEM-resident
            pl.BlockSpec(fw2.shape, lambda i: (0, 0)),
            pl.BlockSpec(fw3.shape, lambda i: (0, 0)),
            pl.BlockSpec(packed["b"].shape, lambda i: (0, 0, 0)),
        ],
        out_specs=pl.BlockSpec((bt, output_dim), lambda i: (i, 0)),
        compiler_params=pltpu.CompilerParams(
            dimension_semantics=("parallel",),                    # megacore on v7x
            vmem_limit_bytes=vmem_limit,
        ),
    )(x, fw1, fw2, fw3, packed["b"])

    if batch_p != batch:
        out = out[:batch]
    return out


def _default_matmul_dtype():
    """bf16 MXU operands on all TPU generations (f32 matmul is a multi-pass
    MXU mode); fusion and accumulation stay f32 regardless."""
    try:
        return jnp.bfloat16 if jax.devices()[0].platform == "tpu" else jnp.float32
    except Exception:
        return jnp.float32


# ----------------------------------------------------------------------------
# Deterministic parameter / noise initialization (mirrors NoisyLinear.__init__)
# ----------------------------------------------------------------------------
def _scale_noise(key, size):
    x = jax.random.normal(key, (size,), dtype=jnp.float32)
    return jnp.sign(x) * jnp.sqrt(jnp.abs(x))


def init_noisy_linear(key, in_features, out_features, sigma_init=0.2):
    k_w, k_b, k_in, k_out = jax.random.split(key, 4)
    mu_range = 1.0 / math.sqrt(in_features)
    w_mu = jax.random.uniform(
        k_w, (out_features, in_features), jnp.float32, -mu_range, mu_range)
    w_sigma = jnp.full((out_features, in_features), sigma_init, jnp.float32)
    b_mu = jax.random.uniform(
        k_b, (out_features,), jnp.float32, -mu_range, mu_range)
    b_sigma = jnp.full((out_features,), sigma_init, jnp.float32)
    eps_in = _scale_noise(k_in, in_features)
    eps_out = _scale_noise(k_out, out_features)
    w_eps = jnp.outer(eps_out, eps_in)
    b_eps = eps_out
    return dict(w_mu=w_mu, w_sigma=w_sigma, w_eps=w_eps,
                b_mu=b_mu, b_sigma=b_sigma, b_eps=b_eps)


def init_noise_dqn(key, input_dim, output_dim):
    k1, k2, k3 = jax.random.split(key, 3)
    return {
        "fc1": init_noisy_linear(k1, input_dim, 64),
        "fc2": init_noisy_linear(k2, 64, 64),
        "fc3": init_noisy_linear(k3, 64, output_dim),
    }


# ----------------------------------------------------------------------------
# Pure-JAX reference (training-mode forward, same as the PyTorch module)
# ----------------------------------------------------------------------------
def noise_dqn_reference(x, params):
    h = x
    for i, name in enumerate(("fc1", "fc2", "fc3")):
        p = params[name]
        w = p["w_mu"] + p["w_sigma"] * p["w_eps"]
        b = p["b_mu"] + p["b_sigma"] * p["b_eps"]
        h = h @ w.T + b
        if i < 2:
            h = jnp.maximum(h, 0.0)
    return h


if __name__ == "__main__":
    key = jax.random.PRNGKey(0)
    k_params, k_x, k_x2 = jax.random.split(key, 3)

    input_dim, output_dim, batch = 16, 4, 8
    params = init_noise_dqn(k_params, input_dim, output_dim)
    packed = pack_noise_dqn_params(params)

    x = jax.random.normal(k_x, (batch, input_dim), dtype=jnp.float32)
    ref = noise_dqn_reference(x, params)

    # f32 path: exact check (valid on every TPU generation).
    fwd_f32 = jax.jit(functools.partial(
        noise_dqn_forward, output_dim=output_dim, matmul_dtype=jnp.float32))
    out = jax.block_until_ready(fwd_f32(x, packed))
    assert out.shape == (batch, output_dim)
    assert jnp.allclose(out, ref, atol=1e-5, rtol=1e-5), "f32 mismatch"

    # Multi-tile path: exercises the 2-tile "parallel" grid + ragged batch pad.
    batch2 = 300
    x2 = jax.random.normal(k_x2, (batch2, input_dim), dtype=jnp.float32)
    ref2 = noise_dqn_reference(x2, params)
    out2 = jax.block_until_ready(fwd_f32(x2, packed))
    assert out2.shape == (batch2, output_dim)
    assert jnp.allclose(out2, ref2, atol=1e-5, rtol=1e-5), "f32 tiled mismatch"

    # bf16 MXU path (default on TPU): fusion/accumulation in f32, loose check.
    mm_dtype = _default_matmul_dtype()
    if mm_dtype == jnp.bfloat16:
        fwd_bf16 = jax.jit(functools.partial(
            noise_dqn_forward, output_dim=output_dim, matmul_dtype=jnp.bfloat16))
        out_bf16 = jax.block_until_ready(fwd_bf16(x, packed))
        assert out_bf16.shape == (batch, output_dim)
        assert jnp.allclose(out_bf16, ref, atol=2e-1, rtol=5e-2), "bf16 mismatch"

    print("KERNEL_OK")
</pallas_src>

<mosaic_0001>
module attributes {stable_mosaic.version = 11 : i64} {
  func.func @fuse_weights_kernel(%arg0: memref<3x16x128xf32, #tpu.memory_space<vmem>>, %arg1: memref<3x128x128xf32, #tpu.memory_space<vmem>>, %arg2: memref<3x128x128xf32, #tpu.memory_space<vmem>>, %arg3: memref<16x128xf32, #tpu.memory_space<vmem>>, %arg4: memref<128x128xf32, #tpu.memory_space<vmem>>, %arg5: memref<128x128xf32, #tpu.memory_space<vmem>>) attributes {dimension_semantics = [], scalar_prefetch = 0 : i64, scratch_operands = 0 : i64, tpu.core_type = #tpu.core_type<tc>} {
    %c0 = arith.constant 0 : index
    %c0_0 = arith.constant 0 : index
    %c0_1 = arith.constant 0 : index
    %0 = vector.load %arg0[%c0, %c0_0, %c0_1] : memref<3x16x128xf32, #tpu.memory_space<vmem>>, vector<1x16x128xf32>
    %1 = vector.shape_cast %0 : vector<1x16x128xf32> to vector<16x128xf32>
    %c1 = arith.constant 1 : index
    %c0_2 = arith.constant 0 : index
    %c0_3 = arith.constant 0 : index
    %2 = vector.load %arg0[%c1, %c0_2, %c0_3] : memref<3x16x128xf32, #tpu.memory_space<vmem>>, vector<1x16x128xf32>
    %3 = vector.shape_cast %2 : vector<1x16x128xf32> to vector<16x128xf32>
    %c2 = arith.constant 2 : index
    %c0_4 = arith.constant 0 : index
    %c0_5 = arith.constant 0 : index
    %4 = vector.load %arg0[%c2, %c0_4, %c0_5] : memref<3x16x128xf32, #tpu.memory_space<vmem>>, vector<1x16x128xf32>
    %5 = vector.shape_cast %4 : vector<1x16x128xf32> to vector<16x128xf32>
    %6 = arith.mulf %3, %5 : vector<16x128xf32>
    %7 = arith.addf %1, %6 : vector<16x128xf32>
    %c0_6 = arith.constant 0 : index
    %c0_7 = arith.constant 0 : index
    %8 = vector.load %arg3[%c0_6, %c0_7] : memref<16x128xf32, #tpu.memory_space<vmem>>, vector<16x128xf32>
    tpu.vector_store %arg3[%c0_6, %c0_7], %7 {strides = array<i32>} : memref<16x128xf32, #tpu.memory_space<vmem>>, vector<16x128xf32>,
    %c0_8 = arith.constant 0 : index
    %c0_9 = arith.constant 0 : index
    %c0_10 = arith.constant 0 : index
    %9 = vector.load %arg1[%c0_8, %c0_9, %c0_10] : memref<3x128x128xf32, #tpu.memory_space<vmem>>, vector<1x128x128xf32>
    %10 = vector.shape_cast %9 : vector<1x128x128xf32> to vector<128x128xf32>
    %c1_11 = arith.constant 1 : index
    %c0_12 = arith.constant 0 : index
    %c0_13 = arith.constant 0 : index
    %11 = vector.load %arg1[%c1_11, %c0_12, %c0_13] : memref<3x128x128xf32, #tpu.memory_space<vmem>>, vector<1x128x128xf32>
    %12 = vector.shape_cast %11 : vector<1x128x128xf32> to vector<128x128xf32>
    %c2_14 = arith.constant 2 : index
    %c0_15 = arith.constant 0 : index
    %c0_16 = arith.constant 0 : index
    %13 = vector.load %arg1[%c2_14, %c0_15, %c0_16] : memref<3x128x128xf32, #tpu.memory_space<vmem>>, vector<1x128x128xf32>
    %14 = vector.shape_cast %13 : vector<1x128x128xf32> to vector<128x128xf32>
    %15 = arith.mulf %12, %14 : vector<128x128xf32>
    %16 = arith.addf %10, %15 : vector<128x128xf32>
    %c0_17 = arith.constant 0 : index
    %c0_18 = arith.constant 0 : index
    %17 = vector.load %arg4[%c0_17, %c0_18] : memref<128x128xf32, #tpu.memory_space<vmem>>, vector<128x128xf32>
    tpu.vector_store %arg4[%c0_17, %c0_18], %16 {strides = array<i32>} : memref<128x128xf32, #tpu.memory_space<vmem>>, vector<128x128xf32>,
    %c0_19 = arith.constant 0 : index
    %c0_20 = arith.constant 0 : index
    %c0_21 = arith.constant 0 : index
    %18 = vector.load %arg2[%c0_19, %c0_20, %c0_21] : memref<3x128x128xf32, #tpu.memory_space<vmem>>, vector<1x128x128xf32>
    %19 = vector.shape_cast %18 : vector<1x128x128xf32> to vector<128x128xf32>
    %c1_22 = arith.constant 1 : index
    %c0_23 = arith.constant 0 : index
    %c0_24 = arith.constant 0 : index
    %20 = vector.load %arg2[%c1_22, %c0_23, %c0_24] : memref<3x128x128xf32, #tpu.memory_space<vmem>>, vector<1x128x128xf32>
    %21 = vector.shape_cast %20 : vector<1x128x128xf32> to vector<128x128xf32>
    %c2_25 = arith.constant 2 : index
    %c0_26 = arith.constant 0 : index
    %c0_27 = arith.constant 0 : index
    %22 = vector.load %arg2[%c2_25, %c0_26, %c0_27] : memref<3x128x128xf32, #tpu.memory_space<vmem>>, vector<1x128x128xf32>
    %23 = vector.shape_cast %22 : vector<1x128x128xf32> to vector<128x128xf32>
    %24 = arith.mulf %21, %23 : vector<128x128xf32>
    %25 = arith.addf %19, %24 : vector<128x128xf32>
    %c0_28 = arith.constant 0 : index
    %c0_29 = arith.constant 0 : index
    %26 = vector.load %arg5[%c0_28, %c0_29] : memref<128x128xf32, #tpu.memory_space<vmem>>, vector<128x128xf32>
    tpu.vector_store %arg5[%c0_28, %c0_29], %25 {strides = array<i32>} : memref<128x128xf32, #tpu.memory_space<vmem>>, vector<128x128xf32>,
    return
  }
}

module attributes {stable_mosaic.version = 11 : i64} {
  func.func @noisy_dqn_kernel(%arg0: i32, %arg1: memref<8x16xf32, #tpu.memory_space<vmem>>, %arg2: memref<16x128xf32, #tpu.memory_space<vmem>>, %arg3: memref<128x128xf32, #tpu.memory_space<vmem>>, %arg4: memref<128x128xf32, #tpu.memory_space<vmem>>, %arg5: memref<3x3x128xf32, #tpu.memory_space<vmem>>, %arg6: memref<8x4xf32, #tpu.memory_space<vmem>>) attributes {dimension_semantics = [#tpu.dimension_semantics<parallel>], iteration_bounds = array<i64: 1>, scalar_prefetch = 0 : i64, scratch_operands = 0 : i64, tpu.core_type = #tpu.core_type<tc>, window_params = [{transform_indices = @transform_0, window_bounds = array<i64: 8, 16>}, {pipeline_mode = #tpu.pipeline_mode<synchronous>, transform_indices = @transform_1, window_bounds = array<i64: 16, 128>}, {pipeline_mode = #tpu.pipeline_mode<synchronous>, transform_indices = @transform_2, window_bounds = array<i64: 128, 128>}, {pipeline_mode = #tpu.pipeline_mode<synchronous>, transform_indices = @transform_3, window_bounds = array<i64: 128, 128>}, {pipeline_mode = #tpu.pipeline_mode<synchronous>, transform_indices = @transform_4, window_bounds = array<i64: 3, 3, 128>}, {transform_indices = @transform_5, window_bounds = array<i64: 8, 4>}]} {
    %c0 = arith.constant 0 : index
    %c0_0 = arith.constant 0 : index
    %0 = vector.load %arg1[%c0, %c0_0] : memref<8x16xf32, #tpu.memory_space<vmem>>, vector<8x16xf32>
    %c0_1 = arith.constant 0 : index
    %c0_2 = arith.constant 0 : index
    %c0_3 = arith.constant 0 : index
    %1 = vector.load %arg5[%c0_1, %c0_2, %c0_3] : memref<3x3x128xf32, #tpu.memory_space<vmem>>, vector<3x3x128xf32>
    %2 = vector.extract_strided_slice %1 {offsets = [0, 0, 0], sizes = [1, 1, 128], strides = [1, 1, 1]} : vector<3x3x128xf32> to vector<1x1x128xf32>
    %3 = vector.shape_cast %2 : vector<1x1x128xf32> to vector<1x128xf32>
    %4 = vector.extract_strided_slice %1 {offsets = [0, 1, 0], sizes = [1, 1, 128], strides = [1, 1, 1]} : vector<3x3x128xf32> to vector<1x1x128xf32>
    %5 = vector.shape_cast %4 : vector<1x1x128xf32> to vector<1x128xf32>
    %6 = vector.extract_strided_slice %1 {offsets = [0, 2, 0], sizes = [1, 1, 128], strides = [1, 1, 1]} : vector<3x3x128xf32> to vector<1x1x128xf32>
    %7 = vector.shape_cast %6 : vector<1x1x128xf32> to vector<1x128xf32>
    %8 = arith.mulf %5, %7 : vector<1x128xf32>
    %9 = arith.addf %3, %8 : vector<1x128xf32>
    %10 = vector.extract_strided_slice %1 {offsets = [1, 0, 0], sizes = [1, 1, 128], strides = [1, 1, 1]} : vector<3x3x128xf32> to vector<1x1x128xf32>
    %11 = vector.shape_cast %10 : vector<1x1x128xf32> to vector<1x128xf32>
    %12 = vector.extract_strided_slice %1 {offsets = [1, 1, 0], sizes = [1, 1, 128], strides = [1, 1, 1]} : vector<3x3x128xf32> to vector<1x1x128xf32>
    %13 = vector.shape_cast %12 : vector<1x1x128xf32> to vector<1x128xf32>
    %14 = vector.extract_strided_slice %1 {offsets = [1, 2, 0], sizes = [1, 1, 128], strides = [1, 1, 1]} : vector<3x3x128xf32> to vector<1x1x128xf32>
    %15 = vector.shape_cast %14 : vector<1x1x128xf32> to vector<1x128xf32>
    %16 = arith.mulf %13, %15 : vector<1x128xf32>
    %17 = arith.addf %11, %16 : vector<1x128xf32>
    %18 = vector.extract_strided_slice %1 {offsets = [2, 0, 0], sizes = [1, 1, 128], strides = [1, 1, 1]} : vector<3x3x128xf32> to vector<1x1x128xf32>
    %19 = vector.shape_cast %18 : vector<1x1x128xf32> to vector<1x128xf32>
    %20 = vector.extract_strided_slice %1 {offsets = [2, 1, 0], sizes = [1, 1, 128], strides = [1, 1, 1]} : vector<3x3x128xf32> to vector<1x1x128xf32>
    %21 = vector.shape_cast %20 : vector<1x1x128xf32> to vector<1x128xf32>
    %22 = vector.extract_strided_slice %1 {offsets = [2, 2, 0], sizes = [1, 1, 128], strides = [1, 1, 1]} : vector<3x3x128xf32> to vector<1x1x128xf32>
    %23 = vector.shape_cast %22 : vector<1x1x128xf32> to vector<1x128xf32>
    %24 = arith.mulf %21, %23 : vector<1x128xf32>
    %25 = arith.addf %19, %24 : vector<1x128xf32>
    %c0_4 = arith.constant 0 : index
    %c0_5 = arith.constant 0 : index
    %26 = vector.load %arg2[%c0_4, %c0_5] : memref<16x128xf32, #tpu.memory_space<vmem>>, vector<16x128xf32>
    %cst = arith.constant dense<0.000000e+00> : vector<8x128xf32>
    %27 = tpu.matmul %0, %26, %cst {dimension_numbers = #tpu.dot_dimension_numbers<[1], [0], [0], [1], [0, 0, 1, 1], [], []>} : vector<8x16xf32>, vector<16x128xf32>, vector<8x128xf32> -> vector<8x128xf32>
    %28 = vector.broadcast %9 : vector<1x128xf32> to vector<8x128xf32>
    %29 = arith.addf %27, %28 : vector<8x128xf32>
    %cst_6 = arith.constant 0.000000e+00 : f32
    %30 = vector.broadcast %cst_6 : f32 to vector<8x128xf32>
    %31 = arith.maximumf %29, %30 : vector<8x128xf32>
    %c0_7 = arith.constant 0 : index
    %c0_8 = arith.constant 0 : index
    %32 = vector.load %arg3[%c0_7, %c0_8] : memref<128x128xf32, #tpu.memory_space<vmem>>, vector<128x128xf32>
    %cst_9 = arith.constant dense<0.000000e+00> : vector<8x128xf32>
    %33 = tpu.matmul %31, %32, %cst_9 {dimension_numbers = #tpu.dot_dimension_numbers<[1], [0], [0], [1], [0, 0, 1, 1], [], []>} : vector<8x128xf32>, vector<128x128xf32>, vector<8x128xf32> -> vector<8x128xf32>
    %34 = vector.broadcast %17 : vector<1x128xf32> to vector<8x128xf32>
    %35 = arith.addf %33, %34 : vector<8x128xf32>
    %cst_10 = arith.constant 0.000000e+00 : f32
    %36 = vector.broadcast %cst_10 : f32 to vector<8x128xf32>
    %37 = arith.maximumf %35, %36 : vector<8x128xf32>
    %c0_11 = arith.constant 0 : index
    %c0_12 = arith.constant 0 : index
    %38 = vector.load %arg4[%c0_11, %c0_12] : memref<128x128xf32, #tpu.memory_space<vmem>>, vector<128x128xf32>
    %cst_13 = arith.constant dense<0.000000e+00> : vector<8x128xf32>
    %39 = tpu.matmul %37, %38, %cst_13 {dimension_numbers = #tpu.dot_dimension_numbers<[1], [0], [0], [1], [0, 0, 1, 1], [], []>} : vector<8x128xf32>, vector<128x128xf32>, vector<8x128xf32> -> vector<8x128xf32>
    %40 = vector.broadcast %25 : vector<1x128xf32> to vector<8x128xf32>
    %41 = arith.addf %39, %40 : vector<8x128xf32>
    %42 = vector.extract_strided_slice %41 {offsets = [0, 0], sizes = [8, 4], strides = [1, 1]} : vector<8x128xf32> to vector<8x4xf32>
    %c0_14 = arith.constant 0 : index
    %c0_15 = arith.constant 0 : index
    %43 = vector.load %arg6[%c0_14, %c0_15] : memref<8x4xf32, #tpu.memory_space<vmem>>, vector<8x4xf32>
    tpu.vector_store %arg6[%c0_14, %c0_15], %42 {strides = array<i32>} : memref<8x4xf32, #tpu.memory_space<vmem>>, vector<8x4xf32>,
    return
  }
  func.func @transform_0(%arg0: i32) -> (i32, i32) {
    %c0_i32 = arith.constant 0 : i32
    %c0_i32_0 = arith.constant 0 : i32
    return %arg0, %c0_i32 : i32, i32
  }
  func.func @transform_1(%arg0: i32) -> (i32, i32) {
    %c0_i32 = arith.constant 0 : i32
    %c0_i32_0 = arith.constant 0 : i32
    %c0_i32_1 = arith.constant 0 : i32
    return %c0_i32, %c0_i32_0 : i32, i32
  }
  func.func @transform_2(%arg0: i32) -> (i32, i32) {
    %c0_i32 = arith.constant 0 : i32
    %c0_i32_0 = arith.constant 0 : i32
    %c0_i32_1 = arith.constant 0 : i32
    return %c0_i32, %c0_i32_0 : i32, i32
  }
  func.func @transform_3(%arg0: i32) -> (i32, i32) {
    %c0_i32 = arith.constant 0 : i32
    %c0_i32_0 = arith.constant 0 : i32
    %c0_i32_1 = arith.constant 0 : i32
    return %c0_i32, %c0_i32_0 : i32, i32
  }
  func.func @transform_4(%arg0: i32) -> (i32, i32, i32) {
    %c0_i32 = arith.constant 0 : i32
    %c0_i32_0 = arith.constant 0 : i32
    %c0_i32_1 = arith.constant 0 : i32
    %c0_i32_2 = arith.constant 0 : i32
    return %c0_i32, %c0_i32_0, %c0_i32_1 : i32, i32, i32
  }
  func.func @transform_5(%arg0: i32) -> (i32, i32) {
    %c0_i32 = arith.constant 0 : i32
    %c0_i32_0 = arith.constant 0 : i32
    return %arg0, %c0_i32 : i32, i32
  }
}

</mosaic_0001>

<bundles_post_ra>
// kernel: noise_dqn_forward.3
= control target key start
LH: loop header
LB: loop body
LE: loop exit
PB: predicated region body
PF: predicated region fallthrough
CT: control target
= control target key end

     0   :  { %10 = vsyncpa [#allocation3], 0  ;;  %s391_s0 = inlined_call_operand.hbm [shape: f32[8,16], index: 0, kind: input, shape index: {}]   ;;  %s392_s1 = inlined_call_operand.vmem [shape: f32[16,128], index: 1, kind: input, shape index: {}]   ;;  %s393_s2 = inlined_call_operand.vmem [shape: f32[128,128], index: 2, kind: input, shape index: {}]   ;;  %s394_s3 = inlined_call_operand.vmem [shape: f32[128,128], index: 3, kind: input, shape index: {}]   ;;  %s395_s4 = inlined_call_operand.hbm [shape: f32[3,3,128], index: 4, kind: input, shape index: {}]   ;;  %s396_s5 = inlined_call_operand.vmem [shape: f32[8,4], index: 5, kind: output, shape index: {}]  }
   0x1   :  { %s17_s20 = sshll.u32 %s391_s0, 4  ;;  %s18_s20 = int_to_ptr.hbm [resolvable:$true] %s17_s20 }
   0x2   :  { %11 = vsyncpa [#allocation5], 0  ;;  %s246_s21 = smov [#allocation2]   ;;  %s33_s25 = sshll.u32 %s395_s4, 4  ;;  %s34_s25 = int_to_ptr.hbm [resolvable:$true] %s33_s25 }
   0x3   :  { %s19_s22 = sshll.u32 %s246_s21, 4  ;;  %s247_s26 = smov [#allocation4]   ;;  %s20_s22 = int_to_ptr.vmem [resolvable:$true] %s19_s22 }
   0x4   :  { %22 = dma.hbm_to_vmem [thread:$0]  %s18_s20, 128, %s20_s22, [#allocation3]  }
   0x5   :  { %s35_s27 = sshll.u32 %s247_s26, 4  ;;  %s248_s28 = smov 64   ;;  %s36_s27 = int_to_ptr.vmem [resolvable:$true] %s35_s27 }
   0x6   :  { %s249_s29 = smov 4  }
   0x7   :  { %41 = dma.hbm_to_vmem [thread:$0]  %s34_s25, 192, %s36_s27, [#allocation5], %s248_s28, %s248_s28, %s249_s29  }
   0x8   :  { %242 = dma.done.wait [#allocation3], 128  }
   0x9   :  { %243 = vsyncadd [#allocation3], 4294967168 }
   0xa   :  { %244 = dma.done.wait [#allocation5], 192  }
   0xb   :  { %245 = vsyncadd [#allocation5], 4294967104  ;;  %v79_v0 = vld [vmem:[%s392_s1 + $0x8] sm:$0xff]  ;;  %v78_v1 = vld [vmem:[%s392_s1] sm:$0xff]  ;;  %vm81_vm0 = vcmask 130048   ;;  %vm181_vm1 = vcmask 31744  }
   0xc   :  { %99 = vmatpush.msra.mxu0 %v79_v0  ;;  %v50_v2 = vld [vmem:[#allocation2] sm:$0xff]  ;;  %v121_v3 = vld [vmem:[%s393_s2 + $0x78] sm:$0xff]  ;;  %v120_v4 = vld [vmem:[%s393_s2 + $0x70] sm:$0xff] }
   0xd   :  { %123 = vmatpush.msra.mxu1 %v121_v3  ;;  %v119_v5 = vld [vmem:[%s393_s2 + $0x68] sm:$0xff]  ;;  %v118_v6 = vld [vmem:[%s393_s2 + $0x60] sm:$0xff]  ;;  %v117_v7 = vld [vmem:[%s393_s2 + $0x58] sm:$0xff] }
   0xe   :  { %100 = vmatpush.msra.mxu0 %v78_v1  ;;  %v116_v8 = vld [vmem:[%s393_s2 + $0x50] sm:$0xff]  ;;  %v115_v9 = vld [vmem:[%s393_s2 + $0x48] sm:$0xff]  ;;  %v114_v10 = vld [vmem:[%s393_s2 + $0x40] sm:$0xff] }
   0xf   :  { %189 = vmatmul.msk.f32.vlgmr.msra.gmra.mxu0 %vm81_vm0, %v50_v2  ;;  %124 = vmatpush.msra.mxu1 %v120_v4  ;;  %v113_v11 = vld [vmem:[%s393_s2 + $0x38] sm:$0xff]  ;;  %v112_v12 = vld [vmem:[%s393_s2 + $0x30] sm:$0xff]  ;;  %v111_v13 = vld [vmem:[%s393_s2 + $0x28] sm:$0xff] }
  0x10   :  { %v110_v14 = vld [vmem:[%s393_s2 + $0x20] sm:$0xff]  ;;  %v109_v15 = vld [vmem:[%s393_s2 + $0x18] sm:$0xff]  ;;  %v108_v16 = vld [vmem:[%s393_s2 + $0x10] sm:$0xff] }
  0x11   :  { %125 = vmatpush.msra.mxu1 %v119_v5  ;;  %v107_v17 = vld [vmem:[%s393_s2 + $0x8] sm:$0xff]  ;;  %v106_v18 = vld [vmem:[%s393_s2] sm:$0xff]  ;;  %v159_v19 = vld [vmem:[%s394_s3 + $0x78] sm:$0xff] }
  0x12   :  { %v158_v20 = vld [vmem:[%s394_s3 + $0x70] sm:$0xff]  ;;  %161 = vmatpush.msra.mxu2 %v159_v19  ;;  %v157_v21 = vld [vmem:[%s394_s3 + $0x68] sm:$0xff]  ;;  %v156_v22 = vld [vmem:[%s394_s3 + $0x60] sm:$0xff] }
  0x13   :  { %126 = vmatpush.msra.mxu1 %v118_v6  ;;  %v51_v23 = vld [vmem:[#allocation4] sm:$0x7]  ;;  %v155_v24 = vld [vmem:[%s394_s3 + $0x58] sm:$0xff]  ;;  %v154_v26 = vld [vmem:[%s394_s3 + $0x50] sm:$0xff] }
  0x14   :  { %162 = vmatpush.msra.mxu2 %v158_v20  ;;  %v55_v25 = vrot.slane %v51_v23, 1  ;;  %v153_v27 = vld [vmem:[%s394_s3 + $0x48] sm:$0xff]  ;;  %v152_v29 = vld [vmem:[%s394_s3 + $0x40] sm:$0xff]  ;;  %v151_v30 = vld [vmem:[%s394_s3 + $0x38] sm:$0xff] }
  0x15   :  { %127 = vmatpush.msra.mxu1 %v117_v7  ;;  %v150_v32 = vld [vmem:[%s394_s3 + $0x30] sm:$0xff]  ;;  %v149_v33 = vld [vmem:[%s394_s3 + $0x28] sm:$0xff]  ;;  %v148_v35 = vld [vmem:[%s394_s3 + $0x20] sm:$0xff] }
  0x16   :  { %163 = vmatpush.msra.mxu2 %v157_v21  ;;  %v57_v28 = vmul.f32 %v55_v25, %v51_v23  ;;  %v147_v36 = vld [vmem:[%s394_s3 + $0x18] sm:$0xff]  ;;  %v146_v41 = vld [vmem:[%s394_s3 + $0x10] sm:$0xff]  ;;  %v145_v42 = vld [vmem:[%s394_s3 + $0x8] sm:$0xff] }
  0x17   :  { %128 = vmatpush.msra.mxu1 %v116_v8  ;;  %v144_v43 = vld [vmem:[%s394_s3] sm:$0xff]  ;;  %v52_v44 = vld [vmem:[#allocation4 + $0x4] sm:$0x7]  ;;  %v53_v53 = vld [vmem:[#allocation4 + $0x8] sm:$0x7] }
  0x18   :  { %164 = vmatpush.msra.mxu2 %v156_v22  ;;  %v59_v31 = vrot.slane %v57_v28, 1  ;;  %v63_v45 = vrot.slane %v52_v44, 1  ;;  %v71_v54 = vrot.slane %v53_v53, 1 }
  0x19   :  { %129 = vmatpush.msra.mxu1 %v115_v9 }
  0x1a   :  { %165 = vmatpush.msra.mxu2 %v155_v24  ;;  %v61_v34 = vadd.f32 %v59_v31, %v51_v23  ;;  %v65_v46 = vmul.f32 %v63_v45, %v52_v44  ;;  %v73_v55 = vmul.f32 %v71_v54, %v53_v53 }
  0x1b   :  { %130 = vmatpush.msra.mxu1 %v114_v10 }
  0x1c   :  { %166 = vmatpush.msra.mxu2 %v154_v26  ;;  %v80_v37 = vperm.slane %v61_v34, 0  ;;  %v67_v47 = vrot.slane %v65_v46, 1  ;;  %v75_v56 = vrot.slane %v73_v55, 1 }
  0x1d   :  { %131 = vmatpush.msra.mxu1 %v113_v11 }
  0x1e   :  { %167 = vmatpush.msra.mxu2 %v153_v27  ;;  %v69_v48 = vadd.f32 %v67_v47, %v52_v44  ;;  %v77_v57 = vadd.f32 %v75_v56, %v53_v53 }
  0x1f   :  { %132 = vmatpush.msra.mxu1 %v112_v12 }
  0x20   :  { %168 = vmatpush.msra.mxu2 %v152_v29  ;;  %v122_v49 = vperm.slane %v69_v48, 0  ;;  %v160_v58 = vperm.slane %v77_v57, 0 }
  0x21   :  { %133 = vmatpush.msra.mxu1 %v111_v13 }
  0x22   :  { %169 = vmatpush.msra.mxu2 %v151_v30 }
  0x23   :  { %134 = vmatpush.msra.mxu1 %v110_v14 }
  0x24   :  { %170 = vmatpush.msra.mxu2 %v150_v32 }
  0x25   :  { %135 = vmatpush.msra.mxu1 %v109_v15 }
  0x26   :  { %171 = vmatpush.msra.mxu2 %v149_v33 }
  0x27   :  { %136 = vmatpush.msra.mxu1 %v108_v16 }
  0x28   :  { %172 = vmatpush.msra.mxu2 %v148_v35 }
  0x29   :  { %137 = vmatpush.msra.mxu1 %v107_v17 }
  0x2a   :  { %173 = vmatpush.msra.mxu2 %v147_v36 }
  0x2b   :  { %138 = vmatpush.msra.mxu1 %v106_v18 }
  0x2c   :  { %174 = vmatpush.msra.mxu2 %v146_v41 }
  0x2e   :  { %175 = vmatpush.msra.mxu2 %v145_v42 }
  0x30   :  { %176 = vmatpush.msra.mxu2 %v144_v43 }
  0x8c   :  { %v102_v38 = vpop.f32.mrf.mxu0 }
  0x8d   :  { %v103_v39 = vadd.f32 %v102_v38, %v80_v37 }
  0x8f   :  { %v105_v40 = vmax.f32 %v103_v39, 0.0 }
  0x91   :  { %139 = vmatmul.f32.vlgmr.msra.gmra.mxu1 %v105_v40 }
 0x10e   :  { %v140_v50 = vpop.f32.mrf.mxu1 }
 0x10f   :  { %v141_v51 = vadd.f32 %v140_v50, %v122_v49 }
 0x111   :  { %v143_v52 = vmax.f32 %v141_v51, 0.0 }
 0x113   :  { %177 = vmatmul.f32.vlgmr.msra.gmra.mxu2 %v143_v52 }
 0x196   :  { %v178_v59 = vpop.f32.mrf.mxu2 }
 0x197   :  { %v179_v60 = vadd.f32 %v178_v59, %v160_v58 }
 0x199   :  { %182 = vst.msk [vmem:[%s396_s5] sm:$0xff] %vm181_vm1, %v179_v60 }
 0x19a   :  { %187 = vsyncpa [#allocation3], 1 }
 0x19b   :  { %188 = vsyncpa [#allocation5], 1 }

// kernel: noise_dqn_forward.2
= control target key start
LH: loop header
LB: loop body
LE: loop exit
PB: predicated region body
PF: predicated region fallthrough
CT: control target
= control target key end

     0   :  { %11 = vsyncpa [#allocation3], 0  ;;  %s515_s0 = inlined_call_operand.hbm [shape: f32[3,16,128], index: 0, kind: input, shape index: {}]   ;;  %s516_s1 = inlined_call_operand.hbm [shape: f32[3,128,128], index: 1, kind: input, shape index: {}]   ;;  %s517_s2 = inlined_call_operand.hbm [shape: f32[3,128,128], index: 2, kind: input, shape index: {}]   ;;  %s518_s3 = inlined_call_operand.vmem [shape: f32[16,128], index: 3, kind: output, shape index: {0}]   ;;  %s519_s4 = inlined_call_operand.vmem [shape: f32[128,128], index: 4, kind: output, shape index: {1}]   ;;  %s520_s5 = inlined_call_operand.vmem [shape: f32[128,128], index: 5, kind: output, shape index: {2}]  }
   0x1   :  { %12 = vsyncpa [#allocation5], 0  ;;  %s30_s20 = sshll.u32 %s516_s1, 4  ;;  %s369_s21 = smov [#allocation4]   ;;  %s31_s20 = int_to_ptr.hbm [resolvable:$true] %s30_s20 }
   0x2   :  { %s32_s22 = sshll.u32 %s369_s21, 4  ;;  %s17_s25 = sshll.u32 %s515_s0, 4  ;;  %s33_s22 = int_to_ptr.vmem [resolvable:$true] %s32_s22  ;;  %s18_s25 = int_to_ptr.hbm [resolvable:$true] %s17_s25 }
   0x3   :  { %s370_s26 = smov 128   ;;  %s371_s27 = smov 8  }
   0x4   :  { %38 = dma.hbm_to_vmem [thread:$0]  %s31_s20, 6144, %s33_s22, [#allocation5], %s370_s26, %s370_s26, %s371_s27  }
   0x5   :  { %s372_s28 = smov [#allocation2]   ;;  %s43_s7 = sshll.u32 %s517_s2, 4  ;;  %s44_s7 = int_to_ptr.hbm [resolvable:$true] %s43_s7 }
   0x6   :  { %s19_s29 = sshll.u32 %s372_s28, 4  ;;  %s373_s1 = smov [#allocation6]   ;;  %s20_s29 = int_to_ptr.vmem [resolvable:$true] %s19_s29 }
   0x7   :  { %25 = dma.hbm_to_vmem [thread:$0]  %s18_s25, 768, %s20_s29, [#allocation3], %s370_s26, %s370_s26, %s371_s27  }
   0x8   :  { %s45_s8 = sshll.u32 %s373_s1, 4  ;;  %s46_s8 = int_to_ptr.vmem [resolvable:$true] %s45_s8 }
   0x9   :  { %51 = dma.hbm_to_vmem [thread:$0]  %s44_s7, 6144, %s46_s8, [#allocation5], %s370_s26, %s370_s26, %s371_s27  }
   0xa   :  { %365 = dma.done.wait [#allocation3], 768  }
   0xb   :  { %366 = vsyncadd [#allocation3], 4294966528 }
   0xc   :  { %367 = dma.done.wait [#allocation5], 12288  }
   0xd   :  { %368 = vsyncadd [#allocation5], 4294955008  ;;  %v64_v0 = vld [vmem:[#allocation2] sm:$0xff]  ;;  %v67_v1 = vld [vmem:[#allocation2 + $0x10] sm:$0xff] }
   0xe   :  { %v70_v2 = vld [vmem:[#allocation2 + $0x20] sm:$0xff]  ;;  %v65_v4 = vld [vmem:[#allocation2 + $0x8] sm:$0xff]  ;;  %v68_v5 = vld [vmem:[#allocation2 + $0x18] sm:$0xff] }
   0xf   :  { %v72_v3 = vmul.f32 %v70_v2, %v67_v1  ;;  %v71_v6 = vld [vmem:[#allocation2 + $0x28] sm:$0xff]  ;;  %v78_v8 = vld [vmem:[#allocation4] sm:$0xff]  ;;  %v79_v13 = vld [vmem:[#allocation4 + $0x8] sm:$0xff] }
  0x10   :  { %v73_v7 = vmul.f32 %v71_v6, %v68_v5  ;;  %v95_v9 = vld [vmem:[#allocation4 + $0x80] sm:$0xff]  ;;  %v96_v14 = vld [vmem:[#allocation4 + $0x88] sm:$0xff]  ;;  %v80_v18 = vld [vmem:[#allocation4 + $0x10] sm:$0xff] }
  0x11   :  { %v112_v10 = vld [vmem:[#allocation4 + $0x100] sm:$0xff]  ;;  %v74_v11 = vadd.f32 %v72_v3, %v64_v0  ;;  %v113_v15 = vld [vmem:[#allocation4 + $0x108] sm:$0xff]  ;;  %v97_v19 = vld [vmem:[#allocation4 + $0x90] sm:$0xff] }
  0x12   :  { %v128_v12 = vmul.f32 %v112_v10, %v95_v9  ;;  %v75_v16 = vadd.f32 %v73_v7, %v65_v4  ;;  %v129_v17 = vmul.f32 %v113_v15, %v96_v14  ;;  %v114_v20 = vld [vmem:[#allocation4 + $0x110] sm:$0xff]  ;;  %v81_v23 = vld [vmem:[#allocation4 + $0x18] sm:$0xff]  ;;  %v82_v28 = vld [vmem:[#allocation4 + $0x20] sm:$0xff] }
  0x13   :  { %76 = vst [vmem:[%s518_s3] sm:$0xff] %v74_v11  ;;  %v130_v22 = vmul.f32 %v114_v20, %v97_v19  ;;  %v98_v24 = vld [vmem:[#allocation4 + $0x98] sm:$0xff]  ;;  %v99_v29 = vld [vmem:[#allocation4 + $0xa0] sm:$0xff]  ;;  %v83_v33 = vld [vmem:[#allocation4 + $0x28] sm:$0xff] }
  0x14   :  { %v144_v21 = vadd.f32 %v128_v12, %v78_v8  ;;  %v115_v25 = vld [vmem:[#allocation4 + $0x118] sm:$0xff]  ;;  %77 = vst [vmem:[%s518_s3 + $0x8] sm:$0xff] %v75_v16  ;;  %v145_v26 = vadd.f32 %v129_v17, %v79_v13  ;;  %v116_v30 = vld [vmem:[#allocation4 + $0x120] sm:$0xff]  ;;  %v100_v34 = vld [vmem:[#allocation4 + $0xa8] sm:$0xff] }
  0x15   :  { %v131_v27 = vmul.f32 %v115_v25, %v98_v24  ;;  %v146_v31 = vadd.f32 %v130_v22, %v80_v18  ;;  %v132_v32 = vmul.f32 %v116_v30, %v99_v29  ;;  %v117_v35 = vld [vmem:[#allocation4 + $0x128] sm:$0xff]  ;;  %v84_v38 = vld [vmem:[#allocation4 + $0x30] sm:$0xff]  ;;  %v85_v43 = vld [vmem:[#allocation4 + $0x38] sm:$0xff] }
  0x16   :  { %160 = vst [vmem:[%s519_s4] sm:$0xff] %v144_v21  ;;  %v133_v37 = vmul.f32 %v117_v35, %v100_v34  ;;  %v101_v39 = vld [vmem:[#allocation4 + $0xb0] sm:$0xff]  ;;  %v102_v44 = vld [vmem:[#allocation4 + $0xb8] sm:$0xff]  ;;  %v86_v48 = vld [vmem:[#allocation4 + $0x40] sm:$0xff] }
  0x17   :  { %161 = vst [vmem:[%s519_s4 + $0x8] sm:$0xff] %v145_v26  ;;  %v147_v36 = vadd.f32 %v131_v27, %v81_v23  ;;  %v118_v40 = vld [vmem:[#allocation4 + $0x130] sm:$0xff]  ;;  %v148_v41 = vadd.f32 %v132_v32, %v82_v28  ;;  %v119_v45 = vld [vmem:[#allocation4 + $0x138] sm:$0xff]  ;;  %v103_v49 = vld [vmem:[#allocation4 + $0xc0] sm:$0xff] }
  0x18   :  { %162 = vst [vmem:[%s519_s4 + $0x10] sm:$0xff] %v146_v31  ;;  %v134_v42 = vmul.f32 %v118_v40, %v101_v39  ;;  %v149_v46 = vadd.f32 %v133_v37, %v83_v33  ;;  %v135_v47 = vmul.f32 %v119_v45, %v102_v44  ;;  %v120_v50 = vld [vmem:[#allocation4 + $0x140] sm:$0xff]  ;;  %v87_v53 = vld [vmem:[#allocation4 + $0x48] sm:$0xff]  ;;  %v88_v58 = vld [vmem:[#allocation4 + $0x50] sm:$0xff] }
  0x19   :  { %163 = vst [vmem:[%s519_s4 + $0x18] sm:$0xff] %v147_v36  ;;  %v136_v52 = vmul.f32 %v120_v50, %v103_v49  ;;  %v104_v54 = vld [vmem:[#allocation4 + $0xc8] sm:$0xff]  ;;  %v105_v59 = vld [vmem:[#allocation4 + $0xd0] sm:$0xff]  ;;  %v89_v63 = vld [vmem:[#allocation4 + $0x58] sm:$0xff] }
  0x1a   :  { %164 = vst [vmem:[%s519_s4 + $0x20] sm:$0xff] %v148_v41  ;;  %v150_v51 = vadd.f32 %v134_v42, %v84_v38  ;;  %v121_v55 = vld [vmem:[#allocation4 + $0x148] sm:$0xff]  ;;  %v151_v56 = vadd.f32 %v135_v47, %v85_v43  ;;  %v122_v60 = vld [vmem:[#allocation4 + $0x150] sm:$0xff]  ;;  %v106_v0 = vld [vmem:[#allocation4 + $0xd8] sm:$0xff] }
  0x1b   :  { %165 = vst [vmem:[%s519_s4 + $0x28] sm:$0xff] %v149_v46  ;;  %v137_v57 = vmul.f32 %v121_v55, %v104_v54  ;;  %v152_v61 = vadd.f32 %v136_v52, %v86_v48  ;;  %v138_v62 = vmul.f32 %v122_v60, %v105_v59  ;;  %v123_v1 = vld [vmem:[#allocation4 + $0x158] sm:$0xff]  ;;  %v90_v4 = vld [vmem:[#allocation4 + $0x60] sm:$0xff]  ;;  %v91_v9 = vld [vmem:[#allocation4 + $0x68] sm:$0xff] }
  0x1c   :  { %166 = vst [vmem:[%s519_s4 + $0x30] sm:$0xff] %v150_v51  ;;  %v139_v3 = vmul.f32 %v123_v1, %v106_v0  ;;  %v107_v5 = vld [vmem:[#allocation4 + $0xe0] sm:$0xff]  ;;  %v108_v10 = vld [vmem:[#allocation4 + $0xe8] sm:$0xff]  ;;  %v92_v14 = vld [vmem:[#allocation4 + $0x70] sm:$0xff] }
  0x1d   :  { %167 = vst [vmem:[%s519_s4 + $0x38] sm:$0xff] %v151_v56  ;;  %v153_v2 = vadd.f32 %v137_v57, %v87_v53  ;;  %v124_v6 = vld [vmem:[#allocation4 + $0x160] sm:$0xff]  ;;  %v154_v7 = vadd.f32 %v138_v62, %v88_v58  ;;  %v125_v11 = vld [vmem:[#allocation4 + $0x168] sm:$0xff]  ;;  %v109_v15 = vld [vmem:[#allocation4 + $0xf0] sm:$0xff] }
  0x1e   :  { %168 = vst [vmem:[%s519_s4 + $0x40] sm:$0xff] %v152_v61  ;;  %v140_v8 = vmul.f32 %v124_v6, %v107_v5  ;;  %v155_v12 = vadd.f32 %v139_v3, %v89_v63  ;;  %v141_v13 = vmul.f32 %v125_v11, %v108_v10  ;;  %v126_v16 = vld [vmem:[#allocation4 + $0x170] sm:$0xff]  ;;  %v93_v19 = vld [vmem:[#allocation4 + $0x78] sm:$0xff]  ;;  %v176_v24 = vld [vmem:[#allocation6] sm:$0xff] }
  0x1f   :  { %169 = vst [vmem:[%s519_s4 + $0x48] sm:$0xff] %v153_v2  ;;  %v142_v18 = vmul.f32 %v126_v16, %v109_v15  ;;  %v110_v20 = vld [vmem:[#allocation4 + $0xf8] sm:$0xff]  ;;  %v193_v25 = vld [vmem:[#allocation6 + $0x80] sm:$0xff]  ;;  %v177_v29 = vld [vmem:[#allocation6 + $0x8] sm:$0xff] }
  0x20   :  { %170 = vst [vmem:[%s519_s4 + $0x50] sm:$0xff] %v154_v7  ;;  %v156_v17 = vadd.f32 %v140_v8, %v90_v4  ;;  %v127_v21 = vld [vmem:[#allocation4 + $0x178] sm:$0xff]  ;;  %v157_v22 = vadd.f32 %v141_v13, %v91_v9  ;;  %v210_v26 = vld [vmem:[#allocation6 + $0x100] sm:$0xff]  ;;  %v194_v30 = vld [vmem:[#allocation6 + $0x88] sm:$0xff] }
  0x21   :  { %171 = vst [vmem:[%s519_s4 + $0x58] sm:$0xff] %v155_v12  ;;  %v143_v23 = vmul.f32 %v127_v21, %v110_v20  ;;  %v158_v27 = vadd.f32 %v142_v18, %v92_v14  ;;  %v226_v28 = vmul.f32 %v210_v26, %v193_v25  ;;  %v211_v31 = vld [vmem:[#allocation6 + $0x108] sm:$0xff]  ;;  %v178_v34 = vld [vmem:[#allocation6 + $0x10] sm:$0xff]  ;;  %v179_v39 = vld [vmem:[#allocation6 + $0x18] sm:$0xff] }
  0x22   :  { %172 = vst [vmem:[%s519_s4 + $0x60] sm:$0xff] %v156_v17  ;;  %v227_v33 = vmul.f32 %v211_v31, %v194_v30  ;;  %v195_v35 = vld [vmem:[#allocation6 + $0x90] sm:$0xff]  ;;  %v196_v40 = vld [vmem:[#allocation6 + $0x98] sm:$0xff]  ;;  %v180_v44 = vld [vmem:[#allocation6 + $0x20] sm:$0xff] }
  0x23   :  { %173 = vst [vmem:[%s519_s4 + $0x68] sm:$0xff] %v157_v22  ;;  %v159_v32 = vadd.f32 %v143_v23, %v93_v19  ;;  %v212_v36 = vld [vmem:[#allocation6 + $0x110] sm:$0xff]  ;;  %v242_v37 = vadd.f32 %v226_v28, %v176_v24  ;;  %v213_v41 = vld [vmem:[#allocation6 + $0x118] sm:$0xff]  ;;  %v197_v45 = vld [vmem:[#allocation6 + $0xa0] sm:$0xff] }
  0x24   :  { %174 = vst [vmem:[%s519_s4 + $0x70] sm:$0xff] %v158_v27  ;;  %v228_v38 = vmul.f32 %v212_v36, %v195_v35  ;;  %v243_v42 = vadd.f32 %v227_v33, %v177_v29  ;;  %v229_v43 = vmul.f32 %v213_v41, %v196_v40  ;;  %v214_v46 = vld [vmem:[#allocation6 + $0x120] sm:$0xff]  ;;  %v181_v49 = vld [vmem:[#allocation6 + $0x28] sm:$0xff]  ;;  %v182_v54 = vld [vmem:[#allocation6 + $0x30] sm:$0xff] }
  0x25   :  { %175 = vst [vmem:[%s519_s4 + $0x78] sm:$0xff] %v159_v32  ;;  %v230_v48 = vmul.f32 %v214_v46, %v197_v45  ;;  %v198_v50 = vld [vmem:[#allocation6 + $0xa8] sm:$0xff]  ;;  %v199_v55 = vld [vmem:[#allocation6 + $0xb0] sm:$0xff]  ;;  %v183_v59 = vld [vmem:[#allocation6 + $0x38] sm:$0xff] }
  0x26   :  { %258 = vst [vmem:[%s520_s5] sm:$0xff] %v242_v37  ;;  %v244_v47 = vadd.f32 %v228_v38, %v178_v34  ;;  %v215_v51 = vld [vmem:[#allocation6 + $0x128] sm:$0xff]  ;;  %v245_v52 = vadd.f32 %v229_v43, %v179_v39  ;;  %v216_v56 = vld [vmem:[#allocation6 + $0x130] sm:$0xff]  ;;  %v200_v60 = vld [vmem:[#allocation6 + $0xb8] sm:$0xff] }
  0x27   :  { %259 = vst [vmem:[%s520_s5 + $0x8] sm:$0xff] %v243_v42  ;;  %v231_v53 = vmul.f32 %v215_v51, %v198_v50  ;;  %v246_v57 = vadd.f32 %v230_v48, %v180_v44  ;;  %v232_v58 = vmul.f32 %v216_v56, %v199_v55  ;;  %v217_v61 = vld [vmem:[#allocation6 + $0x138] sm:$0xff]  ;;  %v184_v0 = vld [vmem:[#allocation6 + $0x40] sm:$0xff]  ;;  %v185_v5 = vld [vmem:[#allocation6 + $0x48] sm:$0xff] }
  0x28   :  { %260 = vst [vmem:[%s520_s5 + $0x10] sm:$0xff] %v244_v47  ;;  %v233_v63 = vmul.f32 %v217_v61, %v200_v60  ;;  %v201_v1 = vld [vmem:[#allocation6 + $0xc0] sm:$0xff]  ;;  %v202_v6 = vld [vmem:[#allocation6 + $0xc8] sm:$0xff]  ;;  %v186_v10 = vld [vmem:[#allocation6 + $0x50] sm:$0xff] }
  0x29   :  { %261 = vst [vmem:[%s520_s5 + $0x18] sm:$0xff] %v245_v52  ;;  %v247_v62 = vadd.f32 %v231_v53, %v181_v49  ;;  %v218_v2 = vld [vmem:[#allocation6 + $0x140] sm:$0xff]  ;;  %v248_v3 = vadd.f32 %v232_v58, %v182_v54  ;;  %v219_v7 = vld [vmem:[#allocation6 + $0x148] sm:$0xff]  ;;  %v203_v11 = vld [vmem:[#allocation6 + $0xd0] sm:$0xff] }
  0x2a   :  { %262 = vst [vmem:[%s520_s5 + $0x20] sm:$0xff] %v246_v57  ;;  %v234_v4 = vmul.f32 %v218_v2, %v201_v1  ;;  %v249_v8 = vadd.f32 %v233_v63, %v183_v59  ;;  %v235_v9 = vmul.f32 %v219_v7, %v202_v6  ;;  %v220_v12 = vld [vmem:[#allocation6 + $0x150] sm:$0xff]  ;;  %v187_v15 = vld [vmem:[#allocation6 + $0x58] sm:$0xff]  ;;  %v188_v20 = vld [vmem:[#allocation6 + $0x60] sm:$0xff] }
  0x2b   :  { %263 = vst [vmem:[%s520_s5 + $0x28] sm:$0xff] %v247_v62  ;;  %v236_v14 = vmul.f32 %v220_v12, %v203_v11  ;;  %v204_v16 = vld [vmem:[#allocation6 + $0xd8] sm:$0xff]  ;;  %v205_v21 = vld [vmem:[#allocation6 + $0xe0] sm:$0xff]  ;;  %v189_v25 = vld [vmem:[#allocation6 + $0x68] sm:$0xff] }
  0x2c   :  { %264 = vst [vmem:[%s520_s5 + $0x30] sm:$0xff] %v248_v3  ;;  %v250_v13 = vadd.f32 %v234_v4, %v184_v0  ;;  %v221_v17 = vld [vmem:[#allocation6 + $0x158] sm:$0xff]  ;;  %v251_v18 = vadd.f32 %v235_v9, %v185_v5  ;;  %v222_v22 = vld [vmem:[#allocation6 + $0x160] sm:$0xff]  ;;  %v206_v26 = vld [vmem:[#allocation6 + $0xe8] sm:$0xff] }
  0x2d   :  { %265 = vst [vmem:[%s520_s5 + $0x38] sm:$0xff] %v249_v8  ;;  %v237_v19 = vmul.f32 %v221_v17, %v204_v16  ;;  %v252_v23 = vadd.f32 %v236_v14, %v186_v10  ;;  %v238_v24 = vmul.f32 %v222_v22, %v205_v21  ;;  %v223_v27 = vld [vmem:[#allocation6 + $0x168] sm:$0xff]  ;;  %v190_v30 = vld [vmem:[#allocation6 + $0x70] sm:$0xff]  ;;  %v191_v35 = vld [vmem:[#allocation6 + $0x78] sm:$0xff] }
  0x2e   :  { %266 = vst [vmem:[%s520_s5 + $0x40] sm:$0xff] %v250_v13  ;;  %v239_v29 = vmul.f32 %v223_v27, %v206_v26  ;;  %v207_v31 = vld [vmem:[#allocation6 + $0xf0] sm:$0xff]  ;;  %v208_v36 = vld [vmem:[#allocation6 + $0xf8] sm:$0xff] }
  0x2f   :  { %267 = vst [vmem:[%s520_s5 + $0x48] sm:$0xff] %v251_v18  ;;  %v253_v28 = vadd.f32 %v237_v19, %v187_v15  ;;  %v224_v32 = vld [vmem:[#allocation6 + $0x170] sm:$0xff]  ;;  %v254_v33 = vadd.f32 %v238_v24, %v188_v20  ;;  %v225_v37 = vld [vmem:[#allocation6 + $0x178] sm:$0xff] }
  0x30   :  { %268 = vst [vmem:[%s520_s5 + $0x50] sm:$0xff] %v252_v23  ;;  %v240_v34 = vmul.f32 %v224_v32, %v207_v31  ;;  %v255_v38 = vadd.f32 %v239_v29, %v189_v25  ;;  %v241_v39 = vmul.f32 %v225_v37, %v208_v36 }
  0x31   :  { %269 = vst [vmem:[%s520_s5 + $0x58] sm:$0xff] %v253_v28 }
  0x32   :  { %270 = vst [vmem:[%s520_s5 + $0x60] sm:$0xff] %v254_v33  ;;  %v256_v40 = vadd.f32 %v240_v34, %v190_v30  ;;  %v257_v41 = vadd.f32 %v241_v39, %v191_v35 }
  0x33   :  { %271 = vst [vmem:[%s520_s5 + $0x68] sm:$0xff] %v255_v38 }
  0x34   :  { %272 = vst [vmem:[%s520_s5 + $0x70] sm:$0xff] %v256_v40 }
  0x35   :  { %273 = vst [vmem:[%s520_s5 + $0x78] sm:$0xff] %v257_v41 }
  0x36   :  { %286 = vsyncpa [#allocation3], 1 }
  0x37   :  { %287 = vsyncpa [#allocation5], 1 }

</bundles_post_ra>
